<compile_context>
chip_gen: v7x
topology: tpu7x:2x2x1
jax: 0.10.0
libtpu: 0.0.40
codegen_flags: <defaults>
</compile_context>

<pallas_src>
import jax
import jax.numpy as jnp
from jax.experimental import pallas as pl
from jax.experimental.pallas import tpu as pltpu

LANE = 128                 # hidden dims padded to one lane group
H1, H2, OUT = 50, 50, 3
OUT_PAD = 8                # output lanes carried through HBM (>= OUT, 8-friendly)
TB_MAX = 1024              # max batch-tile rows


def _round_up(x, m):
    return ((x + m - 1) // m) * m


def _choose_tiling(B):
    """Balanced batch tiling: minimal padding, tiles <= TB_MAX rows."""
    B8 = _round_up(B, 8)
    n = max(1, pl.cdiv(B8, TB_MAX))
    # Keep >= 2 grid steps for moderate+ batches so v7x's two TensorCores both
    # get work; the extra ~0.35us step is negligible on single-TC v5e/v6e.
    if n < 2 and B8 >= 256:
        n = 2
    TB = _round_up(pl.cdiv(B8, n), 8)
    Bp = TB * n
    return TB, Bp, n


def _sigmoid(z):
    # exp and (approx) reciprocal both issue on the EUP slot -> VALU stays free.
    return pl.reciprocal(1.0 + jnp.exp(-z), approx=True)


def mlp_kernel(x_ref, w1_ref, b1_ref, w2_ref, b2_ref, w3_ref, b3_ref, o_ref):
    # x_ref: (TB, D_pad)          w1_ref: (D_pad, 128)  b1_ref: (1, 128)
    # w2_ref: (128, 128)          b2_ref: (1, 128)
    # w3_ref: (128, OUT_PAD)      b3_ref: (1, OUT_PAD)  o_ref: (TB, OUT_PAD)
    x = x_ref[...]

    # Layer 1: padded x columns are zero and padded W1 rows are zero.
    z1 = jnp.dot(x, w1_ref[...], preferred_element_type=jnp.float32) + b1_ref[...]
    h1 = _sigmoid(z1)

    # Layer 2: padded h1 lanes hold sigmoid(0)=0.5, annihilated by the zero
    # rows (>= 50) of the padded W2.
    z2 = jnp.dot(h1, w2_ref[...], preferred_element_type=jnp.float32) + b2_ref[...]
    h2 = _sigmoid(z2)

    # Layer 3: same argument; only lanes [0:3) of the 8-lane output are valid.
    z3 = jnp.dot(h2, w3_ref[...], preferred_element_type=jnp.float32) + b3_ref[...]
    o_ref[...] = _sigmoid(z3).astype(o_ref.dtype)


def mlp_forward(x, packed, out_dim=OUT):
    """x: (B, D_in) f32.  packed: tuple from pack_params()."""
    w1p, b1p, w2p, b2p, w3p, b3p = packed
    B, D = x.shape
    D_pad = w1p.shape[0]
    assert D <= D_pad, "input_dim larger than packed weight expects"

    TB, Bp, grid_b = _choose_tiling(B)

    # Small zero-pad of the input only (Bp x D_pad, D_pad=8 for Iris).
    x_pad = jnp.zeros((Bp, D_pad), jnp.float32).at[:B, :D].set(x.astype(jnp.float32))

    cost = pl.CostEstimate(
        flops=2 * Bp * (D_pad * LANE + LANE * LANE + LANE * OUT_PAD),
        transcendentals=2 * Bp * (LANE + LANE + OUT_PAD),
        bytes_accessed=4 * (Bp * D_pad + Bp * OUT_PAD
                            + D_pad * LANE + LANE * LANE + LANE * OUT_PAD
                            + 2 * LANE + OUT_PAD),
    )

    out_pad = pl.pallas_call(
        mlp_kernel,
        out_shape=jax.ShapeDtypeStruct((Bp, OUT_PAD), jnp.float32),
        grid=(grid_b,),
        in_specs=[
            pl.BlockSpec((TB, D_pad), lambda i: (i, 0)),        # x tile per step
            pl.BlockSpec((D_pad, LANE), lambda i: (0, 0)),      # W1 resident
            pl.BlockSpec((1, LANE), lambda i: (0, 0)),          # b1 resident
            pl.BlockSpec((LANE, LANE), lambda i: (0, 0)),       # W2 resident
            pl.BlockSpec((1, LANE), lambda i: (0, 0)),          # b2 resident
            pl.BlockSpec((LANE, OUT_PAD), lambda i: (0, 0)),    # W3 resident
            pl.BlockSpec((1, OUT_PAD), lambda i: (0, 0)),       # b3 resident
        ],
        out_specs=pl.BlockSpec((TB, OUT_PAD), lambda i: (i, 0)),
        compiler_params=pltpu.CompilerParams(
            dimension_semantics=("parallel",),
        ),
        cost_estimate=cost,
    )(x_pad, w1p, b1p, w2p, b2p, w3p, b3p)

    return out_pad[:B, :out_dim]


def init_params(key, input_dim):
    # Deterministic init mimicking nn.Linear's U(-1/sqrt(fan_in), 1/sqrt(fan_in)).
    # Weights stored as (in_features, out_features) so forward is x @ W + b.
    dims = [(input_dim, H1), (H1, H2), (H2, OUT)]
    params = []
    for (fan_in, fan_out) in dims:
        key, kw, kb = jax.random.split(key, 3)
        bound = 1.0 / jnp.sqrt(jnp.float32(fan_in))
        w = jax.random.uniform(kw, (fan_in, fan_out), jnp.float32, -bound, bound)
        b = jax.random.uniform(kb, (1, fan_out), jnp.float32, -bound, bound)
        params += [w, b]
    return tuple(params)


def pack_params(params, input_dim):
    """Zero-pad (W1,b1,W2,b2,W3,b3) into MXU/lane-friendly tiles.

    Padded rows of each weight block are zero, so the sigmoid(0)=0.5 values in
    padded hidden lanes never leak into valid outputs.
    """
    w1, b1, w2, b2, w3, b3 = params
    assert input_dim <= LANE and H1 <= LANE and H2 <= LANE and OUT <= OUT_PAD

    D_pad = _round_up(max(input_dim, 8), 8)

    w1p = jnp.zeros((D_pad, LANE), jnp.float32).at[:input_dim, :H1].set(w1)
    b1p = jnp.zeros((1, LANE), jnp.float32).at[:, :H1].set(b1)
    w2p = jnp.zeros((LANE, LANE), jnp.float32).at[:H1, :H2].set(w2)
    b2p = jnp.zeros((1, LANE), jnp.float32).at[:, :H2].set(b2)
    w3p = jnp.zeros((LANE, OUT_PAD), jnp.float32).at[:H2, :OUT].set(w3)
    b3p = jnp.zeros((1, OUT_PAD), jnp.float32).at[:, :OUT].set(b3)
    return (w1p, b1p, w2p, b2p, w3p, b3p)


def reference_forward(x, params):
    w1, b1, w2, b2, w3, b3 = params
    h = jax.nn.sigmoid(x @ w1 + b1)
    h = jax.nn.sigmoid(h @ w2 + b2)
    return jax.nn.sigmoid(h @ w3 + b3)


if __name__ == "__main__":
    key = jax.random.PRNGKey(0)
    input_dim = 4   # Iris features
    batch = 8

    key, kx = jax.random.split(key)
    x = jax.random.normal(kx, (batch, input_dim), jnp.float32)
    params = init_params(key, input_dim)

    # Pack parameters once (outside the kernel / per-call path).
    packed = pack_params(params, input_dim)
    packed = jax.block_until_ready(packed)

    out = mlp_forward(x, packed)
    out = jax.block_until_ready(out)
    ref = reference_forward(x, params)
    assert out.shape == (batch, 3)
    # Tolerance loosened vs 1e-5 because sigmoid uses approx EUP reciprocal.
    assert jnp.allclose(out, ref, atol=5e-3, rtol=5e-3)

    # Exercise the balanced-tiling / batch-padding path on an "unlucky" size.
    key, kx2 = jax.random.split(key)
    x2 = jax.random.normal(kx2, (260, input_dim), jnp.float32)
    out2 = jax.block_until_ready(mlp_forward(x2, packed))
    ref2 = reference_forward(x2, params)
    assert out2.shape == (260, 3)
    assert jnp.allclose(out2, ref2, atol=5e-3, rtol=5e-3)

    print("KERNEL_OK")
</pallas_src>

<mosaic_0001>
module attributes {stable_mosaic.version = 11 : i64} {
  func.func @mlp_kernel(%arg0: i32, %arg1: memref<8x8xf32, #tpu.memory_space<vmem>>, %arg2: memref<8x128xf32, #tpu.memory_space<vmem>>, %arg3: memref<1x128xf32, #tpu.memory_space<vmem>>, %arg4: memref<128x128xf32, #tpu.memory_space<vmem>>, %arg5: memref<1x128xf32, #tpu.memory_space<vmem>>, %arg6: memref<128x8xf32, #tpu.memory_space<vmem>>, %arg7: memref<1x8xf32, #tpu.memory_space<vmem>>, %arg8: memref<8x8xf32, #tpu.memory_space<vmem>>) attributes {dimension_semantics = [#tpu.dimension_semantics<parallel>], iteration_bounds = array<i64: 1>, scalar_prefetch = 0 : i64, scratch_operands = 0 : i64, tpu.core_type = #tpu.core_type<tc>, window_params = [{transform_indices = @transform_0, window_bounds = array<i64: 8, 8>}, {pipeline_mode = #tpu.pipeline_mode<synchronous>, transform_indices = @transform_1, window_bounds = array<i64: 8, 128>}, {pipeline_mode = #tpu.pipeline_mode<synchronous>, transform_indices = @transform_2, window_bounds = array<i64: 1, 128>}, {pipeline_mode = #tpu.pipeline_mode<synchronous>, transform_indices = @transform_3, window_bounds = array<i64: 128, 128>}, {pipeline_mode = #tpu.pipeline_mode<synchronous>, transform_indices = @transform_4, window_bounds = array<i64: 1, 128>}, {pipeline_mode = #tpu.pipeline_mode<synchronous>, transform_indices = @transform_5, window_bounds = array<i64: 128, 8>}, {pipeline_mode = #tpu.pipeline_mode<synchronous>, transform_indices = @transform_6, window_bounds = array<i64: 1, 8>}, {transform_indices = @transform_7, window_bounds = array<i64: 8, 8>}]} {
    %c0 = arith.constant 0 : index
    %c0_0 = arith.constant 0 : index
    %0 = vector.load %arg1[%c0, %c0_0] : memref<8x8xf32, #tpu.memory_space<vmem>>, vector<8x8xf32>
    %c0_1 = arith.constant 0 : index
    %c0_2 = arith.constant 0 : index
    %1 = vector.load %arg2[%c0_1, %c0_2] : memref<8x128xf32, #tpu.memory_space<vmem>>, vector<8x128xf32>
    %cst = arith.constant dense<0.000000e+00> : vector<8x128xf32>
    %2 = tpu.matmul %0, %1, %cst {dimension_numbers = #tpu.dot_dimension_numbers<[1], [0], [0], [1], [0, 0, 1, 1], [], []>} : vector<8x8xf32>, vector<8x128xf32>, vector<8x128xf32> -> vector<8x128xf32>
    %c0_3 = arith.constant 0 : index
    %c0_4 = arith.constant 0 : index
    %3 = vector.load %arg3[%c0_3, %c0_4] : memref<1x128xf32, #tpu.memory_space<vmem>>, vector<1x128xf32>
    %4 = vector.broadcast %3 : vector<1x128xf32> to vector<8x128xf32>
    %5 = arith.addf %2, %4 : vector<8x128xf32>
    %cst_5 = arith.constant 0.000000e+00 : f32
    %6 = vector.broadcast %cst_5 : f32 to vector<8x128xf32>
    %7 = arith.subf %6, %5 : vector<8x128xf32>
    %8 = math.exp %7 : vector<8x128xf32>
    %cst_6 = arith.constant 1.000000e+00 : f32
    %9 = vector.broadcast %cst_6 : f32 to vector<8x128xf32>
    %10 = arith.addf %9, %8 : vector<8x128xf32>
    %11 = tpu.reciprocal %10 {approx = true} : vector<8x128xf32> -> vector<8x128xf32>
    %c0_7 = arith.constant 0 : index
    %c0_8 = arith.constant 0 : index
    %12 = vector.load %arg4[%c0_7, %c0_8] : memref<128x128xf32, #tpu.memory_space<vmem>>, vector<128x128xf32>
    %cst_9 = arith.constant dense<0.000000e+00> : vector<8x128xf32>
    %13 = tpu.matmul %11, %12, %cst_9 {dimension_numbers = #tpu.dot_dimension_numbers<[1], [0], [0], [1], [0, 0, 1, 1], [], []>} : vector<8x128xf32>, vector<128x128xf32>, vector<8x128xf32> -> vector<8x128xf32>
    %c0_10 = arith.constant 0 : index
    %c0_11 = arith.constant 0 : index
    %14 = vector.load %arg5[%c0_10, %c0_11] : memref<1x128xf32, #tpu.memory_space<vmem>>, vector<1x128xf32>
    %15 = vector.broadcast %14 : vector<1x128xf32> to vector<8x128xf32>
    %16 = arith.addf %13, %15 : vector<8x128xf32>
    %cst_12 = arith.constant 0.000000e+00 : f32
    %17 = vector.broadcast %cst_12 : f32 to vector<8x128xf32>
    %18 = arith.subf %17, %16 : vector<8x128xf32>
    %19 = math.exp %18 : vector<8x128xf32>
    %cst_13 = arith.constant 1.000000e+00 : f32
    %20 = vector.broadcast %cst_13 : f32 to vector<8x128xf32>
    %21 = arith.addf %20, %19 : vector<8x128xf32>
    %22 = tpu.reciprocal %21 {approx = true} : vector<8x128xf32> -> vector<8x128xf32>
    %c0_14 = arith.constant 0 : index
    %c0_15 = arith.constant 0 : index
    %23 = vector.load %arg6[%c0_14, %c0_15] : memref<128x8xf32, #tpu.memory_space<vmem>>, vector<128x8xf32>
    %cst_16 = arith.constant dense<0.000000e+00> : vector<8x8xf32>
    %24 = tpu.matmul %22, %23, %cst_16 {dimension_numbers = #tpu.dot_dimension_numbers<[1], [0], [0], [1], [0, 0, 1, 1], [], []>} : vector<8x128xf32>, vector<128x8xf32>, vector<8x8xf32> -> vector<8x8xf32>
    %c0_17 = arith.constant 0 : index
    %c0_18 = arith.constant 0 : index
    %25 = vector.load %arg7[%c0_17, %c0_18] : memref<1x8xf32, #tpu.memory_space<vmem>>, vector<1x8xf32>
    %26 = vector.broadcast %25 : vector<1x8xf32> to vector<8x8xf32>
    %27 = arith.addf %24, %26 : vector<8x8xf32>
    %cst_19 = arith.constant 0.000000e+00 : f32
    %28 = vector.broadcast %cst_19 : f32 to vector<8x8xf32>
    %29 = arith.subf %28, %27 : vector<8x8xf32>
    %30 = math.exp %29 : vector<8x8xf32>
    %cst_20 = arith.constant 1.000000e+00 : f32
    %31 = vector.broadcast %cst_20 : f32 to vector<8x8xf32>
    %32 = arith.addf %31, %30 : vector<8x8xf32>
    %33 = tpu.reciprocal %32 {approx = true} : vector<8x8xf32> -> vector<8x8xf32>
    %c0_21 = arith.constant 0 : index
    %c0_22 = arith.constant 0 : index
    %34 = vector.load %arg8[%c0_21, %c0_22] : memref<8x8xf32, #tpu.memory_space<vmem>>, vector<8x8xf32>
    tpu.vector_store %arg8[%c0_21, %c0_22], %33 {strides = array<i32>} : memref<8x8xf32, #tpu.memory_space<vmem>>, vector<8x8xf32>,
    return
  }
  func.func @transform_0(%arg0: i32) -> (i32, i32) {
    %c0_i32 = arith.constant 0 : i32
    %c0_i32_0 = arith.constant 0 : i32
    return %arg0, %c0_i32 : i32, i32
  }
  func.func @transform_1(%arg0: i32) -> (i32, i32) {
    %c0_i32 = arith.constant 0 : i32
    %c0_i32_0 = arith.constant 0 : i32
    %c0_i32_1 = arith.constant 0 : i32
    return %c0_i32, %c0_i32_0 : i32, i32
  }
  func.func @transform_2(%arg0: i32) -> (i32, i32) {
    %c0_i32 = arith.constant 0 : i32
    %c0_i32_0 = arith.constant 0 : i32
    %c0_i32_1 = arith.constant 0 : i32
    return %c0_i32, %c0_i32_0 : i32, i32
  }
  func.func @transform_3(%arg0: i32) -> (i32, i32) {
    %c0_i32 = arith.constant 0 : i32
    %c0_i32_0 = arith.constant 0 : i32
    %c0_i32_1 = arith.constant 0 : i32
    return %c0_i32, %c0_i32_0 : i32, i32
  }
  func.func @transform_4(%arg0: i32) -> (i32, i32) {
    %c0_i32 = arith.constant 0 : i32
    %c0_i32_0 = arith.constant 0 : i32
    %c0_i32_1 = arith.constant 0 : i32
    return %c0_i32, %c0_i32_0 : i32, i32
  }
  func.func @transform_5(%arg0: i32) -> (i32, i32) {
    %c0_i32 = arith.constant 0 : i32
    %c0_i32_0 = arith.constant 0 : i32
    %c0_i32_1 = arith.constant 0 : i32
    return %c0_i32, %c0_i32_0 : i32, i32
  }
  func.func @transform_6(%arg0: i32) -> (i32, i32) {
    %c0_i32 = arith.constant 0 : i32
    %c0_i32_0 = arith.constant 0 : i32
    %c0_i32_1 = arith.constant 0 : i32
    return %c0_i32, %c0_i32_0 : i32, i32
  }
  func.func @transform_7(%arg0: i32) -> (i32, i32) {
    %c0_i32 = arith.constant 0 : i32
    %c0_i32_0 = arith.constant 0 : i32
    return %arg0, %c0_i32 : i32, i32
  }
}

</mosaic_0001>

<bundles_post_ra>
// kernel: tpu_custom_call.1
= control target key start
LH: loop header
LB: loop body
LE: loop exit
PB: predicated region body
PF: predicated region fallthrough
CT: control target
= control target key end

     0   :  { %12 = vsyncpa [#allocation3], 0  ;;  %s762_s0 = inlined_call_operand.vmem [shape: f32[8,8], index: 0, kind: input, shape index: {}]   ;;  %s763_s1 = inlined_call_operand.hbm [shape: f32[8,128], index: 1, kind: input, shape index: {}]   ;;  %s764_s2 = inlined_call_operand.vmem [shape: f32[1,128], index: 2, kind: input, shape index: {}]   ;;  %s765_s3 = inlined_call_operand.vmem [shape: f32[128,128], index: 3, kind: input, shape index: {}]   ;;  %s766_s4 = inlined_call_operand.vmem [shape: f32[1,128], index: 4, kind: input, shape index: {}]   ;;  %s767_s5 = inlined_call_operand.vmem [shape: f32[128,8], index: 5, kind: input, shape index: {}]   ;;  %s768_s6 = inlined_call_operand.vmem [shape: f32[1,8], index: 6, kind: input, shape index: {}]   ;;  %s769_s7 = inlined_call_operand.hbm [shape: f32[8,8], index: 7, kind: output, shape index: {}]  }
   0x1   :  { %13 = vsyncpa [#allocation4], 0  ;;  %s567_s24 = smov [#allocation2]   ;;  %s519_s28 = scalar_lea.hbm %s763_s1, 128 }
   0x2   :  { %s22_s25 = sshll.u32 %s567_s24, 4  ;;  %p520_p0 = scmp.ne.s32.totalorder %s763_s1, %s519_s28  ;;  %s23_s25 = int_to_ptr.vmem [resolvable:$true] %s22_s25 }
   0x3   :  { %p523_p1 = scmp.lt.u32.totalorder %s519_s28, %s763_s1 }
   0x5   :  { %p525_p2 = pnand %p523_p1, %p520_p0 }
   0x7   :  { %528 = shalt.err (!%p525_p2)
}
   0x8   :  { %s529_s10 = scalar_lea.vmem %s23_s25, 128  ;;  %p534_p4 = scmp.lt.s32.totalorder %s23_s25, %s23_s25 }
   0x9   :  { %p530_p3 = scmp.ne.s32.totalorder %s23_s25, %s529_s10  ;;  %p535_p5 = scmp.lt.s32.totalorder %s529_s10, %s529_s10 }
   0xb   :  { %p536_p6 = por %p535_p5, %p534_p4 }
   0xd   :  { %p537_p7 = pnand %p536_p6, %p530_p3 }
   0xf   :  { %540 = shalt.err (!%p537_p7)
}
  0x10   :  { %25 = dma.hbm_to_vmem [thread:$0]  %s763_s1, 128, %s23_s25, [#allocation3]  }
  0x11   :  { %563 = dma.done.wait [#allocation3], 128  }
  0x12   :  { %564 = vsyncadd [#allocation3], 4294967168  ;;  %v568_v0 = vmov 0.0   ;;  %vm569_vm0 = vmmov 0   ;;  %v570_v1 = vmov 0.0|0.0   ;;  %vm48_vm1 = vcmask 64512  }
  0x13   :  { %379 = vmatprep.subr.mxu0 %v568_v0  ;;  %381 = vmatprep.mubr.msk.f32.mxu0 %vm569_vm0, %v568_v0  ;;  %v40_v2 = vld [vmem:[#allocation2] sm:$0xff]  ;;  %v128_v5 = vld [vmem:[%s765_s3 + $0x8] sm:$0xff]  ;;  %v129_v7 = vld [vmem:[%s765_s3 + $0x10] sm:$0xff] }
  0x14   :  { %454 = vmatprep.subr.bf16.mxu1 %v570_v1  ;;  %416 = vmatprep.mubr.msk.f32.mxu1 %vm569_vm0, %v568_v0  ;;  %v39_v3 = vld [vmem:[%s762_s0] sm:$0xff]  ;;  %v130_v8 = vld [vmem:[%s765_s3 + $0x18] sm:$0xff]  ;;  %v132_v11 = vld [vmem:[%s765_s3 + $0x28] sm:$0xff] }
  0x15   :  { %380 = vmatpush3.msra.mxu0 %v40_v2  ;;  %v127_v4 = vld [vmem:[%s765_s3] sm:$0xff]  ;;  %v458_v9 = vpack.c.bf16 %v130_v8, %v129_v7  ;;  %v133_v13 = vld [vmem:[%s765_s3 + $0x30] sm:$0xff]  ;;  %v134_v14 = vld [vmem:[%s765_s3 + $0x38] sm:$0xff] }
  0x16   :  { %382 = vmatmul.mubr.msk.f32.vlgmr.msra.gmra.mrb[0].mxu0 %vm48_vm1, %v39_v3  ;;  %478 = vmatprep.subr.bf16.mxu0 %v570_v1  ;;  %v455_v6 = vpack.c.bf16 %v128_v5, %v127_v4  ;;  %v131_v10 = vld [vmem:[%s765_s3 + $0x20] sm:$0xff]  ;;  %v464_v15 = vpack.c.bf16 %v134_v14, %v133_v13  ;;  %v136_v17 = vld [vmem:[%s765_s3 + $0x48] sm:$0xff]  ;;  %v137_v19 = vld [vmem:[%s765_s3 + $0x50] sm:$0xff] }
  0x17   :  { %451 = vmatprep.mubr.msk.f32.mxu0 %vm569_vm0, %v568_v0  ;;  %v461_v12 = vpack.c.bf16 %v132_v11, %v131_v10  ;;  %v135_v16 = vld [vmem:[%s765_s3 + $0x40] sm:$0xff]  ;;  %v138_v20 = vld [vmem:[%s765_s3 + $0x58] sm:$0xff]  ;;  %v140_v23 = vld [vmem:[%s765_s3 + $0x68] sm:$0xff] }
  0x18   :  { %456 = vmatpush3.bf16.msra.mxu1 %v455_v6  ;;  %v467_v18 = vpack.c.bf16 %v136_v17, %v135_v16  ;;  %v470_v21 = vpack.c.bf16 %v138_v20, %v137_v19  ;;  %v139_v22 = vld [vmem:[%s765_s3 + $0x60] sm:$0xff]  ;;  %v141_v25 = vld [vmem:[%s765_s3 + $0x70] sm:$0xff]  ;;  %v142_v26 = vld [vmem:[%s765_s3 + $0x78] sm:$0xff] }
  0x19   :  { %457 = vmatprep.subr.bf16.mxu1 %v570_v1  ;;  %v473_v24 = vpack.c.bf16 %v140_v23, %v139_v22  ;;  %v476_v27 = vpack.c.bf16 %v142_v26, %v141_v25  ;;  %v339_v28 = vld [vmem:[%s764_s2] ss:$0 sm:$0xff]  ;;  %v226_v38 = vld [vmem:[%s767_s5 + $0x8] sm:$0xff]  ;;  %v227_v40 = vld [vmem:[%s767_s5 + $0x10] sm:$0xff] }
  0x1a   :  { %v225_v37 = vld [vmem:[%s767_s5] sm:$0xff]  ;;  %v228_v41 = vld [vmem:[%s767_s5 + $0x18] sm:$0xff]  ;;  %v230_v44 = vld [vmem:[%s767_s5 + $0x28] sm:$0xff] }
  0x1b   :  { %v479_v39 = vpack.c.bf16 %v226_v38, %v225_v37  ;;  %v482_v42 = vpack.c.bf16 %v228_v41, %v227_v40  ;;  %v229_v43 = vld [vmem:[%s767_s5 + $0x20] sm:$0xff]  ;;  %v231_v46 = vld [vmem:[%s767_s5 + $0x30] sm:$0xff]  ;;  %v232_v47 = vld [vmem:[%s767_s5 + $0x38] sm:$0xff] }
  0x1c   :  { %459 = vmatpush3.bf16.msra.mxu1 %v458_v9  ;;  %v485_v45 = vpack.c.bf16 %v230_v44, %v229_v43  ;;  %v488_v48 = vpack.c.bf16 %v232_v47, %v231_v46  ;;  %v233_v49 = vld [vmem:[%s767_s5 + $0x40] sm:$0xff]  ;;  %v234_v50 = vld [vmem:[%s767_s5 + $0x48] sm:$0xff]  ;;  %v235_v52 = vld [vmem:[%s767_s5 + $0x50] sm:$0xff] }
  0x1d   :  { %460 = vmatprep.subr.bf16.mxu1 %v570_v1  ;;  %480 = vmatpush3.bf16.msra.mxu0 %v479_v39  ;;  %v491_v51 = vpack.c.bf16 %v234_v50, %v233_v49  ;;  %v236_v53 = vld [vmem:[%s767_s5 + $0x58] sm:$0xff]  ;;  %v237_v55 = vld [vmem:[%s767_s5 + $0x60] sm:$0xff]  ;;  %v238_v56 = vld [vmem:[%s767_s5 + $0x68] sm:$0xff] }
  0x1e   :  { %481 = vmatprep.subr.bf16.mxu0 %v570_v1  ;;  %v494_v54 = vpack.c.bf16 %v236_v53, %v235_v52  ;;  %v497_v57 = vpack.c.bf16 %v238_v56, %v237_v55  ;;  %v239_v58 = vld [vmem:[%s767_s5 + $0x70] sm:$0xff]  ;;  %v240_v59 = vld [vmem:[%s767_s5 + $0x78] sm:$0xff]  ;;  %v341_v61 = vld [vmem:[%s766_s4] ss:$0 sm:$0xff]  ;;  %s571_s4 = smov [#allocation5]  }
  0x1f   :  { %v500_v60 = vpack.c.bf16 %v240_v59, %v239_v58  ;;  %s330_s28 = sshll.u32 %s571_s4, 4  ;;  %s331_s28 = int_to_ptr.vmem [resolvable:$true] %s330_s28 }
  0x20   :  { %462 = vmatpush3.bf16.msra.mxu1 %v461_v12  ;;  %s541_s29 = scalar_lea.vmem %s331_s28, 128  ;;  %p546_p9 = scmp.lt.s32.totalorder %s331_s28, %s331_s28 }
  0x21   :  { %463 = vmatprep.subr.bf16.mxu1 %v570_v1  ;;  %483 = vmatpush3.bf16.msra.mxu0 %v482_v42  ;;  %p542_p8 = scmp.ne.s32.totalorder %s331_s28, %s541_s29  ;;  %p547_p10 = scmp.lt.s32.totalorder %s541_s29, %s541_s29 }
  0x22   :  { %484 = vmatprep.subr.bf16.mxu0 %v570_v1 }
  0x23   :  { %p548_p11 = por %p547_p10, %p546_p9 }
  0x24   :  { %465 = vmatpush3.bf16.msra.mxu1 %v464_v15 }
  0x25   :  { %466 = vmatprep.subr.bf16.mxu1 %v570_v1  ;;  %486 = vmatpush3.bf16.msra.mxu0 %v485_v45  ;;  %p549_p12 = pnand %p548_p11, %p542_p8 }
  0x26   :  { %487 = vmatprep.subr.bf16.mxu0 %v570_v1 }
  0x28   :  { %468 = vmatpush3.bf16.msra.mxu1 %v467_v18 }
  0x29   :  { %469 = vmatprep.subr.bf16.mxu1 %v570_v1  ;;  %489 = vmatpush3.bf16.msra.mxu0 %v488_v48 }
  0x2a   :  { %490 = vmatprep.subr.bf16.mxu0 %v570_v1 }
  0x2c   :  { %471 = vmatpush3.bf16.msra.mxu1 %v470_v21 }
  0x2d   :  { %472 = vmatprep.subr.bf16.mxu1 %v570_v1  ;;  %492 = vmatpush3.bf16.msra.mxu0 %v491_v51 }
  0x2e   :  { %493 = vmatprep.subr.bf16.mxu0 %v570_v1 }
  0x30   :  { %474 = vmatpush3.bf16.msra.mxu1 %v473_v24 }
  0x31   :  { %475 = vmatprep.subr.bf16.mxu1 %v570_v1  ;;  %495 = vmatpush3.bf16.msra.mxu0 %v494_v54 }
  0x32   :  { %496 = vmatprep.subr.bf16.mxu0 %v570_v1 }
  0x34   :  { %477 = vmatpush3.bf16.msra.mxu1 %v476_v27 }
  0x35   :  { %498 = vmatpush3.bf16.msra.mxu0 %v497_v57 }
  0x36   :  { %499 = vmatprep.subr.bf16.mxu0 %v570_v1  ;;  %v342_v1 = vld [vmem:[%s768_s6] ss:$0 sm:$0xff] }
  0x39   :  { %501 = vmatpush3.bf16.msra.mxu0 %v500_v60 }
  0xe9   :  { %v118_v29 = vpop.f32.mrb[0].mxu0 }
  0xea   :  { %v119_v30 = vadd.f32 %v339_v28, %v118_v29  ;;  %v383_v31 = vpop.f32.mrb[1].mxu0 }
  0xec   :  { %v122_v32 = vsub.f32 0.0, %v119_v30 }
  0xee   :  { %v123_v33 = vmul.f32 1.442695, %v122_v32 }
  0xf0   :  { %507 = vpow2.f32 %v123_v33 }
  0xfa   :  { %v508_v34 = vpop.eup %507 }
  0xfb   :  { %v125_v35 = vadd.f32 1.0, %v508_v34 }
  0xfd   :  { %509 = vrcp.f32 %v125_v35 }
 0x107   :  { %v510_v36 = vpop.eup %509 }
 0x108   :  { %417 = vmatmul.mubr.f32.vlgmr.msra.gmra.mrb[0].mxu1 %v510_v36 }
 0x1db   :  { %v216_v62 = vpop.f32.mrb[0].mxu1 }
 0x1dc   :  { %v217_v63 = vadd.f32 %v341_v61, %v216_v62  ;;  %v418_v0 = vpop.f32.mrb[1].mxu1 }
 0x1de   :  { %v220_v2 = vsub.f32 0.0, %v217_v63 }
 0x1e0   :  { %v221_v3 = vmul.f32 1.442695, %v220_v2 }
 0x1e2   :  { %511 = vpow2.f32 %v221_v3 }
 0x1ec   :  { %v512_v4 = vpop.eup %511 }
 0x1ed   :  { %v223_v5 = vadd.f32 1.0, %v512_v4 }
 0x1ef   :  { %513 = vrcp.f32 %v223_v5 }
 0x1f9   :  { %v514_v6 = vpop.eup %513 }
 0x1fa   :  { %452 = vmatmul.mubr.f32.vlgmr.msra.gmra.mrb[2].mxu0 %v514_v6 }
 0x2cd   :  { %v314_v7 = vpop.f32.mrb[2].mxu0 }
 0x2ce   :  { %v315_v8 = vadd.f32 %v342_v1, %v314_v7  ;;  %v453_v9 = vpop.f32.mrb[3].mxu0 }
 0x2d0   :  { %v318_v10 = vsub.f32 0.0, %v315_v8 }
 0x2d2   :  { %v319_v11 = vmul.f32 1.442695, %v318_v10 }
 0x2d4   :  { %515 = vpow2.f32 %v319_v11 }
 0x2de   :  { %v516_v12 = vpop.eup %515 }
 0x2df   :  { %v321_v13 = vadd.f32 1.0, %v516_v12 }
 0x2e1   :  { %517 = vrcp.f32 %v321_v13 }
 0x2eb   :  { %v518_v14 = vpop.eup %517 }
 0x2ec   :  { %323 = vst.msk [vmem:[#allocation5] sm:$0xff] %vm48_vm1, %v518_v14 }
 0x2ed   :  { %552 = shalt.err (!%p549_p12)
}
 0x2ee   :  { %s553_s8 = scalar_lea.hbm %s769_s7, 128 }
 0x2ef   :  { %p554_p13 = scmp.ne.s32.totalorder %s769_s7, %s553_s8  ;;  %p557_p0 = scmp.lt.u32.totalorder %s553_s8, %s769_s7 }
 0x2f1   :  { %p559_p1 = pnand %p557_p0, %p554_p13 }
 0x2f3   :  { %562 = shalt.err (!%p559_p1)
}
 0x2f4   :  { %333 = dma.vmem_to_hbm [thread:$0]  %s331_s28, 128, %s769_s7, [#allocation4]  }
 0x2f5   :  { %565 = dma.done.wait [#allocation4], 128  }
 0x2f6   :  { %566 = vsyncadd [#allocation4], 4294967168 }
 0x2f7   :  { %337 = vsyncpa [#allocation3], 1 }
 0x2f8   :  { %338 = vsyncpa [#allocation4], 1 }

</bundles_post_ra>
